<compile_context>
chip_gen: v5e
topology: v5e:2x2
jax: 0.10.0
libtpu: 0.0.40
codegen_flags: <defaults>
</compile_context>

<pallas_src>
import numpy as np
import jax
import jax.numpy as jnp
from jax.experimental import pallas as pl
from jax.experimental.pallas import tpu as pltpu

# ----------------------------------------------------------------------------
# STFT constants (scaled-down version of filter_length=1024, n_overlap=4).
# ----------------------------------------------------------------------------
FILTER_LENGTH = 16
N_OVERLAP = 4
HOP_LENGTH = FILTER_LENGTH // N_OVERLAP      # 4
WIN_LENGTH = FILTER_LENGTH                   # 16
CUTOFF = FILTER_LENGTH // 2 + 1              # 9
SCALE = float(FILTER_LENGTH) / float(HOP_LENGTH)

LANE = 128
SUBLANE = 8


def _round_up(x, m):
    return ((x + m - 1) // m) * m


C_PAD = _round_up(CUTOFF, LANE)          # 9  -> 128  (513  -> 640  at full scale)
FL_PAD = _round_up(FILTER_LENGTH, LANE)  # 16 -> 128  (1024 -> 1024 at full scale)


def _hann_window(win_length):
    # scipy.signal.get_window('hann', N, fftbins=True)
    n = np.arange(win_length)
    return 0.5 - 0.5 * np.cos(2.0 * np.pi * n / win_length)


def make_stft_bases():
    """Split, transposed, lane-zero-padded STFT bases (tacotron2 STFT).

    Returns:
      fwd_real_t, fwd_imag_t : (FILTER_LENGTH, C_PAD)
      inv_real,  inv_imag    : (C_PAD, FL_PAD)
    Padded rows/columns are zero, so they are mathematically inert.
    """
    fourier = np.fft.fft(np.eye(FILTER_LENGTH))
    fb = np.vstack([np.real(fourier[:CUTOFF, :]),
                    np.imag(fourier[:CUTOFF, :])]).astype(np.float64)
    inv = np.linalg.pinv(SCALE * fb).T                       # (2C, FL)
    win = _hann_window(WIN_LENGTH)                           # pad_center no-op (WIN==FL)
    fwd = (fb * win[None, :]).astype(np.float32)             # (2C, FL)
    invb = (inv * win[None, :]).astype(np.float32)           # (2C, FL)

    fwd_r_t = np.zeros((FILTER_LENGTH, C_PAD), np.float32)
    fwd_i_t = np.zeros((FILTER_LENGTH, C_PAD), np.float32)
    fwd_r_t[:, :CUTOFF] = fwd[:CUTOFF, :].T
    fwd_i_t[:, :CUTOFF] = fwd[CUTOFF:, :].T

    inv_r = np.zeros((C_PAD, FL_PAD), np.float32)
    inv_i = np.zeros((C_PAD, FL_PAD), np.float32)
    inv_r[:CUTOFF, :FILTER_LENGTH] = invb[:CUTOFF, :]
    inv_i[:CUTOFF, :FILTER_LENGTH] = invb[CUTOFF:, :]
    return fwd_r_t, fwd_i_t, inv_r, inv_i


def window_sumsquare(n_frames):
    """librosa-style window_sumsquare with a periodic hann window (norm=None)."""
    n = FILTER_LENGTH + HOP_LENGTH * (n_frames - 1)
    x = np.zeros(n, dtype=np.float32)
    win_sq = (_hann_window(WIN_LENGTH) ** 2).astype(np.float32)   # pad_center no-op
    for i in range(n_frames):
        s = i * HOP_LENGTH
        x[s:min(n, s + FILTER_LENGTH)] += win_sq[:max(0, min(FILTER_LENGTH, n - s))]
    return x


# ----------------------------------------------------------------------------
# Fused kernel: STFT forward (2 matmuls) -> denoise ratio -> recombine ->
#               STFT inverse (2 matmuls).  One row-block of B*n_frames frames
#               per grid step; everything lane/sublane aligned.
# ----------------------------------------------------------------------------
def _stft_denoise_kernel(frames_ref, fwd_r_ref, fwd_i_ref, inv_r_ref, inv_i_ref,
                         bias_ref, out_ref):
    frames = frames_ref[...]                                              # (TM, FL)

    # STFT forward: two lane-aligned matmuls (no lane-offset slice of a fused basis).
    real = jnp.dot(frames, fwd_r_ref[...], preferred_element_type=jnp.float32)  # (TM, C_PAD)
    imag = jnp.dot(frames, fwd_i_ref[...], preferred_element_type=jnp.float32)

    # denoise:  max(mag - bias*strength, 0) / mag  ==  max(1 - b * rsqrt(mag^2), 0)
    # (guarded at mag == 0, where the original also produces 0 since bias >= 0)
    mag2 = real * real + imag * imag
    nz = mag2 > 0.0
    inv_mag = jax.lax.rsqrt(jnp.where(nz, mag2, 1.0))                     # EUP slot
    ratio = jnp.where(nz, jnp.maximum(1.0 - bias_ref[...] * inv_mag, 0.0), 0.0)

    # recombine (mag_dn * e^{i*phase}) and STFT inverse; output is lane-dense.
    out_ref[...] = (
        jnp.dot(real * ratio, inv_r_ref[...], preferred_element_type=jnp.float32)
        + jnp.dot(imag * ratio, inv_i_ref[...], preferred_element_type=jnp.float32))


# ----------------------------------------------------------------------------
# Wrapper = Denoiser.forward(audio, strength)
# ----------------------------------------------------------------------------
def denoiser_forward(audio, bias_spec, strength=0.1):
    """audio: (B, T) float32 -> (B, 1, T) float32 (matches Denoiser.forward)."""
    audio = audio.astype(jnp.float32)
    B, T = audio.shape
    pad = FILTER_LENGTH // 2

    # reflect padding (F.pad mode='reflect') -- glue
    padded = jnp.pad(audio, ((0, 0), (pad, pad)), mode="reflect")         # (B, T + FL)
    L = padded.shape[1]
    n_frames = (L - FILTER_LENGTH) // HOP_LENGTH + 1
    L_out = (n_frames - 1) * HOP_LENGTH + FILTER_LENGTH                   # OLA length

    # Frame extraction as dense shifted slices (hop | filter_length): no gather.
    groups = padded[:, :L_out].reshape(B, L_out // HOP_LENGTH, HOP_LENGTH)
    frames = jnp.concatenate(
        [groups[:, j:j + n_frames, :] for j in range(N_OVERLAP)], axis=-1)  # (B, nF, FL)

    # Flatten batch*frames into one big aligned matmul problem.
    M = B * n_frames
    # Keep the parallel grid >= 2 steps (feeds both v7x TCs) while staying
    # sublane-aligned; cap block rows at 256 for production-scale VMEM budgets.
    TM = min(256, _round_up(pl.cdiv(M, 2), SUBLANE))
    M_pad = _round_up(M, TM)
    frames_2d = jnp.pad(frames.reshape(M, FILTER_LENGTH), ((0, M_pad - M), (0, 0)))

    fwd_r_t, fwd_i_t, inv_r, inv_i = make_stft_bases()
    fwd_r_t = jnp.asarray(fwd_r_t)
    fwd_i_t = jnp.asarray(fwd_i_t)
    inv_r = jnp.asarray(inv_r)
    inv_i = jnp.asarray(inv_i)

    # Fold strength into the bias spectrum on the host side; lane-pad to C_PAD.
    bias_scaled = jnp.pad(bias_spec.astype(jnp.float32) * jnp.float32(strength),
                          ((0, 0), (0, C_PAD - CUTOFF)))                  # (1, C_PAD)

    inv_frames_pad = pl.pallas_call(
        _stft_denoise_kernel,
        out_shape=jax.ShapeDtypeStruct((M_pad, FL_PAD), jnp.float32),
        grid=(M_pad // TM,),
        in_specs=[
            pl.BlockSpec((TM, FILTER_LENGTH), lambda i: (i, 0)),          # frames
            pl.BlockSpec((FILTER_LENGTH, C_PAD), lambda i: (0, 0)),       # fwd real^T
            pl.BlockSpec((FILTER_LENGTH, C_PAD), lambda i: (0, 0)),       # fwd imag^T
            pl.BlockSpec((C_PAD, FL_PAD), lambda i: (0, 0)),              # inv real
            pl.BlockSpec((C_PAD, FL_PAD), lambda i: (0, 0)),              # inv imag
            pl.BlockSpec((1, C_PAD), lambda i: (0, 0)),                   # bias*strength
        ],
        out_specs=pl.BlockSpec((TM, FL_PAD), lambda i: (i, 0)),
        compiler_params=pltpu.CompilerParams(
            dimension_semantics=("parallel",),
            vmem_limit_bytes=48 * 1024 * 1024,
        ),
    )(frames_2d, fwd_r_t, fwd_i_t, inv_r, inv_i, bias_scaled)

    inv_frames = inv_frames_pad[:M, :FILTER_LENGTH].reshape(B, n_frames, FILTER_LENGTH)

    # Overlap-add (conv_transpose1d, stride=hop) as N_OVERLAP dense shifted adds
    # (no scatter-add): chunk j of every frame lands at offset j*hop.
    chunks = inv_frames.reshape(B, n_frames, N_OVERLAP, HOP_LENGTH)
    ola = jnp.zeros((B, L_out), jnp.float32)
    for j in range(N_OVERLAP):
        seg = chunks[:, :, j, :].reshape(B, n_frames * HOP_LENGTH)
        ola = ola + jnp.pad(
            seg, ((0, 0), (j * HOP_LENGTH, L_out - (j + n_frames) * HOP_LENGTH)))

    # window-sum normalization + filter/hop scaling folded into one precomputed
    # reciprocal multiply (no per-element divide / compare at run time).
    wsum = window_sumsquare(n_frames)
    tiny = np.finfo(np.float32).tiny
    norm = np.where(wsum > tiny, SCALE / wsum, SCALE).astype(np.float32)
    audio_denoised = (ola * jnp.asarray(norm)[None, :])[:, pad:-pad]      # strip reflect pad

    return audio_denoised[:, None, :]                                     # (B, 1, T)


if __name__ == "__main__":
    key = jax.random.PRNGKey(0)
    k_audio, k_bias = jax.random.split(key)
    B, T = 2, 64
    audio = jax.random.normal(k_audio, (B, T), dtype=jnp.float32)

    # TODO(synk): in the real module bias_spec = |STFT(waveglow.infer(zeros, sigma=0))|
    # at frame 0; the full WaveGlow model is out of scope, so use a deterministic
    # non-negative synthetic bias spectrum of shape (1, cutoff).
    bias_spec = jax.random.uniform(k_bias, (1, CUTOFF), dtype=jnp.float32) * 0.5

    out = denoiser_forward(audio, bias_spec, strength=0.1)
    out = jax.block_until_ready(out)
    assert out.shape == (B, 1, T)
    assert bool(jnp.all(jnp.isfinite(out)))
    print("KERNEL_OK")
</pallas_src>

<mosaic_0001>
module attributes {stable_mosaic.version = 11 : i64} {
  func.func @_stft_denoise_kernel(%arg0: i32, %arg1: memref<24x16xf32, #tpu.memory_space<vmem>>, %arg2: memref<16x128xf32, #tpu.memory_space<vmem>>, %arg3: memref<16x128xf32, #tpu.memory_space<vmem>>, %arg4: memref<128x128xf32, #tpu.memory_space<vmem>>, %arg5: memref<128x128xf32, #tpu.memory_space<vmem>>, %arg6: memref<1x128xf32, #tpu.memory_space<vmem>>, %arg7: memref<24x128xf32, #tpu.memory_space<vmem>>) attributes {dimension_semantics = [#tpu.dimension_semantics<parallel>], iteration_bounds = array<i64: 2>, scalar_prefetch = 0 : i64, scratch_operands = 0 : i64, tpu.core_type = #tpu.core_type<tc>, window_params = [{transform_indices = @transform_0, window_bounds = array<i64: 24, 16>}, {pipeline_mode = #tpu.pipeline_mode<synchronous>, transform_indices = @transform_1, window_bounds = array<i64: 16, 128>}, {pipeline_mode = #tpu.pipeline_mode<synchronous>, transform_indices = @transform_2, window_bounds = array<i64: 16, 128>}, {pipeline_mode = #tpu.pipeline_mode<synchronous>, transform_indices = @transform_3, window_bounds = array<i64: 128, 128>}, {pipeline_mode = #tpu.pipeline_mode<synchronous>, transform_indices = @transform_4, window_bounds = array<i64: 128, 128>}, {pipeline_mode = #tpu.pipeline_mode<synchronous>, transform_indices = @transform_5, window_bounds = array<i64: 1, 128>}, {transform_indices = @transform_6, window_bounds = array<i64: 24, 128>}]} {
    %c0 = arith.constant 0 : index
    %c0_0 = arith.constant 0 : index
    %0 = vector.load %arg1[%c0, %c0_0] : memref<24x16xf32, #tpu.memory_space<vmem>>, vector<24x16xf32>
    %c0_1 = arith.constant 0 : index
    %c0_2 = arith.constant 0 : index
    %1 = vector.load %arg2[%c0_1, %c0_2] : memref<16x128xf32, #tpu.memory_space<vmem>>, vector<16x128xf32>
    %cst = arith.constant dense<0.000000e+00> : vector<24x128xf32>
    %2 = tpu.matmul %0, %1, %cst {dimension_numbers = #tpu.dot_dimension_numbers<[1], [0], [0], [1], [0, 0, 1, 1], [], []>} : vector<24x16xf32>, vector<16x128xf32>, vector<24x128xf32> -> vector<24x128xf32>
    %c0_3 = arith.constant 0 : index
    %c0_4 = arith.constant 0 : index
    %3 = vector.load %arg3[%c0_3, %c0_4] : memref<16x128xf32, #tpu.memory_space<vmem>>, vector<16x128xf32>
    %cst_5 = arith.constant dense<0.000000e+00> : vector<24x128xf32>
    %4 = tpu.matmul %0, %3, %cst_5 {dimension_numbers = #tpu.dot_dimension_numbers<[1], [0], [0], [1], [0, 0, 1, 1], [], []>} : vector<24x16xf32>, vector<16x128xf32>, vector<24x128xf32> -> vector<24x128xf32>
    %5 = arith.mulf %2, %2 : vector<24x128xf32>
    %6 = arith.mulf %4, %4 : vector<24x128xf32>
    %7 = arith.addf %5, %6 : vector<24x128xf32>
    %cst_6 = arith.constant 0.000000e+00 : f32
    %8 = vector.broadcast %cst_6 : f32 to vector<24x128xf32>
    %9 = arith.cmpf ogt, %7, %8 : vector<24x128xf32>
    %cst_7 = arith.constant 1.000000e+00 : f32
    %10 = vector.broadcast %cst_7 : f32 to vector<24x128xf32>
    %11 = arith.select %9, %7, %10 : vector<24x128xi1>, vector<24x128xf32>
    %12 = math.rsqrt %11 : vector<24x128xf32>
    %c0_8 = arith.constant 0 : index
    %c0_9 = arith.constant 0 : index
    %13 = vector.load %arg6[%c0_8, %c0_9] : memref<1x128xf32, #tpu.memory_space<vmem>>, vector<1x128xf32>
    %14 = vector.broadcast %13 : vector<1x128xf32> to vector<24x128xf32>
    %15 = arith.mulf %14, %12 : vector<24x128xf32>
    %cst_10 = arith.constant 1.000000e+00 : f32
    %16 = vector.broadcast %cst_10 : f32 to vector<24x128xf32>
    %17 = arith.subf %16, %15 : vector<24x128xf32>
    %cst_11 = arith.constant 0.000000e+00 : f32
    %18 = vector.broadcast %cst_11 : f32 to vector<24x128xf32>
    %19 = arith.maximumf %17, %18 : vector<24x128xf32>
    %cst_12 = arith.constant 0.000000e+00 : f32
    %20 = vector.broadcast %cst_12 : f32 to vector<24x128xf32>
    %21 = arith.select %9, %19, %20 : vector<24x128xi1>, vector<24x128xf32>
    %22 = arith.mulf %2, %21 : vector<24x128xf32>
    %c0_13 = arith.constant 0 : index
    %c0_14 = arith.constant 0 : index
    %23 = vector.load %arg4[%c0_13, %c0_14] : memref<128x128xf32, #tpu.memory_space<vmem>>, vector<128x128xf32>
    %cst_15 = arith.constant dense<0.000000e+00> : vector<24x128xf32>
    %24 = tpu.matmul %22, %23, %cst_15 {dimension_numbers = #tpu.dot_dimension_numbers<[1], [0], [0], [1], [0, 0, 1, 1], [], []>} : vector<24x128xf32>, vector<128x128xf32>, vector<24x128xf32> -> vector<24x128xf32>
    %25 = arith.mulf %4, %21 : vector<24x128xf32>
    %c0_16 = arith.constant 0 : index
    %c0_17 = arith.constant 0 : index
    %26 = vector.load %arg5[%c0_16, %c0_17] : memref<128x128xf32, #tpu.memory_space<vmem>>, vector<128x128xf32>
    %cst_18 = arith.constant dense<0.000000e+00> : vector<24x128xf32>
    %27 = tpu.matmul %25, %26, %cst_18 {dimension_numbers = #tpu.dot_dimension_numbers<[1], [0], [0], [1], [0, 0, 1, 1], [], []>} : vector<24x128xf32>, vector<128x128xf32>, vector<24x128xf32> -> vector<24x128xf32>
    %28 = arith.addf %24, %27 : vector<24x128xf32>
    %c0_19 = arith.constant 0 : index
    %c0_20 = arith.constant 0 : index
    %29 = vector.load %arg7[%c0_19, %c0_20] : memref<24x128xf32, #tpu.memory_space<vmem>>, vector<24x128xf32>
    tpu.vector_store %arg7[%c0_19, %c0_20], %28 {strides = array<i32>} : memref<24x128xf32, #tpu.memory_space<vmem>>, vector<24x128xf32>,
    return
  }
  func.func @transform_0(%arg0: i32) -> (i32, i32) {
    %c0_i32 = arith.constant 0 : i32
    %c0_i32_0 = arith.constant 0 : i32
    return %arg0, %c0_i32 : i32, i32
  }
  func.func @transform_1(%arg0: i32) -> (i32, i32) {
    %c0_i32 = arith.constant 0 : i32
    %c0_i32_0 = arith.constant 0 : i32
    %c0_i32_1 = arith.constant 0 : i32
    return %c0_i32, %c0_i32_0 : i32, i32
  }
  func.func @transform_2(%arg0: i32) -> (i32, i32) {
    %c0_i32 = arith.constant 0 : i32
    %c0_i32_0 = arith.constant 0 : i32
    %c0_i32_1 = arith.constant 0 : i32
    return %c0_i32, %c0_i32_0 : i32, i32
  }
  func.func @transform_3(%arg0: i32) -> (i32, i32) {
    %c0_i32 = arith.constant 0 : i32
    %c0_i32_0 = arith.constant 0 : i32
    %c0_i32_1 = arith.constant 0 : i32
    return %c0_i32, %c0_i32_0 : i32, i32
  }
  func.func @transform_4(%arg0: i32) -> (i32, i32) {
    %c0_i32 = arith.constant 0 : i32
    %c0_i32_0 = arith.constant 0 : i32
    %c0_i32_1 = arith.constant 0 : i32
    return %c0_i32, %c0_i32_0 : i32, i32
  }
  func.func @transform_5(%arg0: i32) -> (i32, i32) {
    %c0_i32 = arith.constant 0 : i32
    %c0_i32_0 = arith.constant 0 : i32
    %c0_i32_1 = arith.constant 0 : i32
    return %c0_i32, %c0_i32_0 : i32, i32
  }
  func.func @transform_6(%arg0: i32) -> (i32, i32) {
    %c0_i32 = arith.constant 0 : i32
    %c0_i32_0 = arith.constant 0 : i32
    return %arg0, %c0_i32 : i32, i32
  }
}

</mosaic_0001>

<bundles_post_ra>
// kernel: tpu_custom_call.1
= control target key start
LH: loop header
LB: loop body
LE: loop exit
PB: predicated region body
PF: predicated region fallthrough
CT: control target
= control target key end

     0   :  { %11 = vsyncpa [#allocation3], 0  ;;  %s1036_s0 = inlined_call_operand.vmem [shape: f32[48,16], index: 0, kind: input, shape index: {}]   ;;  %s1037_s1 = inlined_call_operand.vmem [shape: f32[16,128], index: 1, kind: input, shape index: {}]   ;;  %s1038_s2 = inlined_call_operand.vmem [shape: f32[16,128], index: 2, kind: input, shape index: {}]   ;;  %s1039_s3 = inlined_call_operand.hbm [shape: f32[128,128], index: 3, kind: input, shape index: {}]   ;;  %s1040_s4 = inlined_call_operand.hbm [shape: f32[128,128], index: 4, kind: input, shape index: {}]   ;;  %s1041_s5 = inlined_call_operand.vmem [shape: f32[1,128], index: 5, kind: input, shape index: {}]   ;;  %s1042_s6 = inlined_call_operand.hbm [shape: f32[48,128], index: 6, kind: output, shape index: {}]  }
   0x1   :  { %12 = vsyncpa [#allocation6], 0 }
   0x2   :  { %13 = vsyncpa [#allocation4], 0 }
   0x3   :  { %15 = vsyncpa [#allocation4 + $0x1], 0  ;;  %s906_s21 = smov 0   ;;  %s908_s22 = smov 0  }
   0x4   :  { %s910_s23 = smov 0   ;;  %s912_s24 = smov 0  }
   0x5 LB: > { %s927_s25 = sadd.s32 4294967295, %s863_s24   ;;  %s610_s26 = sadd.s32 4294967294, %s863_s24   ;;  %s863_s24 = sphi %s912_s24, %s1049_s24   ;;  %s859_s23 = sphi %s910_s23, %s1048_s23   ;;  %s855_s22 = sphi %s908_s22, %s1047_s22   ;;  %s851_s21 = sphi %s906_s21, %s1046_s21  }
   0x6   : > { %s931_s27 = sadd.s32 1, %s863_s24   ;;  %s159_s28 = sadd.s32 1, %s859_s23 }
   0x7   : > { %s156_s29 = ssub.s32 %s863_s24, %s931_s27  ;;  %p169_p0 = scmp.ne.s32.totalorder %s859_s23, %s855_s22 }
   0x8   : > { %p157_p1 = scmp.eq.s32.totalorder %s156_s29, 0  ;;  %p170_p2 = scmp.eq.s32.totalorder %s927_s25, 1 }
   0x9   : > { %p175_p3 = scmp.ne.s32.totalorder %s855_s22, %s851_s21  ;;  %p176_p4 = scmp.eq.s32.totalorder %s610_s26, 1 }
   0xa   : > { %s942_s30 = scalar_select %p157_p1, %s859_s23, %s159_s28  }
   0xb   : > { %p944_p5 = por %p170_p2, %p169_p0  ;;  %p948_p6 = por %p176_p4, %p175_p3 }
   0xc   : > { %p611_p7 = scmp.ge.s32.totalorder %s863_s24, 1  ;;  %p183_p8 = scmp.lt.s32.totalorder %s863_s24, 3 }
   0xd   : > { %p683_p9 = scmp.eq.s32.totalorder %s927_s25, 0  ;;  %s200_s12 = sshll.u32 %s1039_s3, 4  ;;  %s201_s12 = int_to_ptr.hbm [resolvable:$true] %s200_s12 }
   0xe   : > { %p955_p10 = pnand %p611_p7, %p183_p8  ;;  %s865_s13 = smov [#allocation2]  }
   0xf   : > { %s202_s14 = sshll.u32 %s865_s13, 4  ;;  %s214_s17 = sshll.u32 %s1040_s4, 4  ;;  %s203_s14 = int_to_ptr.vmem [resolvable:$true] %s202_s14  ;;  %s215_s17 = int_to_ptr.hbm [resolvable:$true] %s214_s17 }
  0x10   : > { %p672_p11 = pneg %p955_p10  ;;  %s866_s18 = smov 128  }
  0x11   : > { %s867_s19 = smov 8   ;;  %s868_s20 = smov [#allocation5]  }
  0x12   : > { %p673_p12 = pnand %p683_p9, %p672_p11  ;;  %s216_s26 = sshll.u32 %s868_s20, 4  ;;  %s217_s26 = int_to_ptr.vmem [resolvable:$true] %s216_s26 }
  0x13   : > { %244 = sbr.rel (%p955_p10) target bundleno = 348 (0x15c), region = 44 }
  0x14   : > { %675 = dma.hbm_to_vmem [thread:$0]  (!%p673_p12), %s201_s12, 2048, %s203_s14, [#allocation3], %s866_s18, %s866_s18, %s867_s19  }
  0x15   : > { %678 = dma.hbm_to_vmem [thread:$0]  (!%p673_p12), %s215_s17, 2048, %s217_s26, [#allocation6], %s866_s18, %s866_s18, %s867_s19  }
  0x18   : > { %838 = dma.done.wait (%p683_p9), [#allocation3], 2048  }
  0x19   : > { %840 = vsyncadd (%p683_p9), [#allocation3], 4294965248 }
  0x1a   : > { %842 = dma.done.wait (%p683_p9), [#allocation6], 2048  }
  0x1b   : > { %844 = vsyncadd (%p683_p9), [#allocation6], 4294965248  ;;  %s280_s28 = smul.u32 3, %s927_s25  ;;  %v291_v0 = vld [vmem:[%s1037_s1 + $0x8] sm:$0xff]  ;;  %v290_v2 = vld [vmem:[%s1037_s1] sm:$0xff]  ;;  %vm292_vm0 = vcmask 130048  }
  0x1c   : > { %v329_v1 = vld [vmem:[%s1038_s2 + $0x8] sm:$0xff]  ;;  %316 = vmatpush.msra.mxu0 %v291_v0  ;;  %v328_v3 = vld [vmem:[%s1038_s2] sm:$0xff]  ;;  %v454_v7 = vld [vmem:[#allocation5 + $0x78] sm:$0xff]  ;;  %s628_s9 = smul.u32 24, %s927_s25  ;;  %s813_s20 = scalar_lea.hbm %s1042_s6, 48 }
  0x1d   : > { %p281_p13 = scmp.lt.s32.totalorder %s280_s28, 5  ;;  %344 = vmatpush.msra.mxu1 %v329_v1  ;;  %v435_v8 = vld [vmem:[#allocation2 + $0x78] sm:$0xff]  ;;  %v453_v9 = vld [vmem:[#allocation5 + $0x70] sm:$0xff]  ;;  %629 = vmatpush.msra.mxu2 %v454_v7  ;;  %v452_v11 = vld [vmem:[#allocation5 + $0x68] sm:$0xff] }
  0x1e   : > { %317 = vmatpush.msra.mxu0 %v290_v2  ;;  %v434_v10 = vld [vmem:[#allocation2 + $0x70] sm:$0xff]  ;;  %645 = vmatpush.msra.mxu3 %v435_v8  ;;  %v433_v12 = vld [vmem:[#allocation2 + $0x68] sm:$0xff]  ;;  %v451_v13 = vld [vmem:[#allocation5 + $0x60] sm:$0xff]  ;;  %s522_s13 = scalar_lea.hbm %s1042_s6, %s628_s9 }
  0x1f   : > { %s1051_s28 = smov (!%p281_p13, %s280_s28), 5  ;;  %345 = vmatpush.msra.mxu1 %v328_v3  ;;  %630 = vmatpush.msra.mxu2 %v453_v9  ;;  %v432_v14 = vld [vmem:[#allocation2 + $0x60] sm:$0xff]  ;;  %v450_v15 = vld [vmem:[#allocation5 + $0x58] sm:$0xff]  ;;  %v449_v17 = vld [vmem:[#allocation5 + $0x50] sm:$0xff]  ;;  %s525_s15 = sshll.u32 %s522_s13, 4  ;;  %s526_s15 = int_to_ptr.hbm [resolvable:$true] %s525_s15 }
  0x20   : > { %s618_s29 = sshll.u32 %s1051_s28, 3  ;;  %455 = vmatpush.msrb.mxu0 %v454_v7  ;;  %646 = vmatpush.msra.mxu3 %v434_v10  ;;  %v431_v16 = vld [vmem:[#allocation2 + $0x58] sm:$0xff]  ;;  %v430_v18 = vld [vmem:[#allocation2 + $0x50] sm:$0xff]  ;;  %v448_v19 = vld [vmem:[#allocation5 + $0x48] sm:$0xff]  ;;  %s277_s28 = sand.u32 1, %s855_s22  }
  0x21   : > { %s284_s17 = scalar_lea.vmem %s1036_s0, %s618_s29  ;;  %481 = vmatpush.msrb.mxu1 %v435_v8  ;;  %631 = vmatpush.msra.mxu2 %v452_v11  ;;  %v429_v20 = vld [vmem:[#allocation2 + $0x48] sm:$0xff]  ;;  %v447_v21 = vld [vmem:[#allocation5 + $0x40] sm:$0xff]  ;;  %v446_v23 = vld [vmem:[#allocation5 + $0x38] sm:$0xff]  ;;  %s661_s29 = smul.u32 24, %s277_s28 }
  0x22   : > { %v287_v4 = vld [vmem:[%s284_s17] sm:$0xff]  ;;  %v288_v5 = vld [vmem:[%s284_s17 + $0x8] sm:$0xff]  ;;  %v289_v6 = vld [vmem:[%s284_s17 + $0x10] sm:$0xff]  ;;  %456 = vmatpush.msrb.mxu0 %v453_v9  ;;  %647 = vmatpush.msra.mxu3 %v433_v12  ;;  %s511_s16 = scalar_lea.sflag [#allocation4], %s277_s28  ;;  %s807_s17 = sshra.s32 %s526_s15, 4  ;;  %s808_s17 = int_to_ptr.hbm [resolvable:$true] %s807_s17 }
  0x23   : > { %619 = vmatmul.msk.f32.vlgmr.msra.gmra.mxu0 %vm292_vm0, %v287_v4  ;;  %622 = vmatmul.msk.f32.vlgmr.msra.gmra.mxu1 %vm292_vm0, %v287_v4  ;;  %v428_v22 = vld [vmem:[#allocation2 + $0x40] sm:$0xff]  ;;  %v427_v24 = vld [vmem:[#allocation2 + $0x38] sm:$0xff]  ;;  %v445_v25 = vld [vmem:[#allocation5 + $0x30] sm:$0xff]  ;;  %s279_s10 = scalar_lea.vmem [#allocation7], %s661_s29  ;;  %s809_s25 = scalar_lea.hbm %s808_s17, 24 }
  0x24   : > { %482 = vmatpush.msrb.mxu1 %v434_v10  ;;  %457 = vmatpush.msrb.mxu0 %v452_v11  ;;  %v426_v26 = vld [vmem:[#allocation2 + $0x30] sm:$0xff]  ;;  %v444_v27 = vld [vmem:[#allocation5 + $0x28] sm:$0xff]  ;;  %v443_v29 = vld [vmem:[#allocation5 + $0x20] sm:$0xff]  ;;  %s523_s14 = sshll.u32 %s279_s10, 4  ;;  %p810_p0 = scmp.ne.s32.totalorder %s808_s17, %s809_s25  ;;  %s524_s14 = int_to_ptr.vmem [resolvable:$true] %s523_s14 }
  0x25   : > { %632 = vmatpush.msra.mxu2 %v451_v13  ;;  %648 = vmatpush.msra.mxu3 %v432_v14  ;;  %v425_v28 = vld [vmem:[#allocation2 + $0x28] sm:$0xff]  ;;  %v424_v30 = vld [vmem:[#allocation2 + $0x20] sm:$0xff]  ;;  %v442_v31 = vld [vmem:[#allocation5 + $0x18] sm:$0xff]  ;;  %p814_p3 = scmp.lt.s32.totalorder %s808_s17, %s1042_s6  ;;  %p815_p4 = scmp.lt.s32.totalorder %s813_s20, %s809_s25 }
  0x26   : > { %483 = vmatpush.msrb.mxu1 %v433_v12  ;;  %458 = vmatpush.msrb.mxu0 %v451_v13  ;;  %v423_v32 = vld [vmem:[#allocation2 + $0x18] sm:$0xff]  ;;  %v441_v33 = vld [vmem:[#allocation5 + $0x10] sm:$0xff]  ;;  %v440_v35 = vld [vmem:[#allocation5 + $0x8] sm:$0xff]  ;;  %p811_p1 = pnand %p810_p0, %p944_p5 }
  0x27   : > { %633 = vmatpush.msra.mxu2 %v450_v15  ;;  %649 = vmatpush.msra.mxu3 %v431_v16  ;;  %v422_v34 = vld [vmem:[#allocation2 + $0x10] sm:$0xff]  ;;  %v421_v36 = vld [vmem:[#allocation2 + $0x8] sm:$0xff]  ;;  %v439_v39 = vld [vmem:[#allocation5] sm:$0xff]  ;;  %p816_p7 = por %p815_p4, %p814_p3 }
  0x28   : > { %484 = vmatpush.msrb.mxu1 %v432_v14  ;;  %459 = vmatpush.msrb.mxu0 %v450_v15  ;;  %v420_v40 = vld [vmem:[#allocation2] sm:$0xff]  ;;  %p812_p2 = pneg %p811_p1 }
  0x29   : > { %634 = vmatpush.msra.mxu2 %v449_v17  ;;  %650 = vmatpush.msra.mxu3 %v430_v18  ;;  %v726_v62 = vld [vmem:[%s1041_s5] ss:$0 sm:$0xff] }
  0x2a   : > { %485 = vmatpush.msrb.mxu1 %v431_v16  ;;  %460 = vmatpush.msrb.mxu0 %v449_v17  ;;  %p817_p8 = pnand %p816_p7, %p812_p2 }
  0x2b   : > { %620 = vmatmul.msk.f32.gmra.mxu0 %vm292_vm0, %v288_v5  ;;  %623 = vmatmul.msk.f32.gmra.mxu1 %vm292_vm0, %v288_v5 }
  0x2c   : > { %486 = vmatpush.msrb.mxu1 %v430_v18  ;;  %461 = vmatpush.msrb.mxu0 %v448_v19 }
  0x2d   : > { %635 = vmatpush.msra.mxu2 %v448_v19  ;;  %651 = vmatpush.msra.mxu3 %v429_v20 }
  0x2e   : > { %487 = vmatpush.msrb.mxu1 %v429_v20  ;;  %462 = vmatpush.msrb.mxu0 %v447_v21 }
  0x2f   : > { %636 = vmatpush.msra.mxu2 %v447_v21  ;;  %652 = vmatpush.msra.mxu3 %v428_v22 }
  0x30   : > { %488 = vmatpush.msrb.mxu1 %v428_v22  ;;  %463 = vmatpush.msrb.mxu0 %v446_v23 }
  0x31   : > { %637 = vmatpush.msra.mxu2 %v446_v23  ;;  %653 = vmatpush.msra.mxu3 %v427_v24 }
  0x32   : > { %489 = vmatpush.msrb.mxu1 %v427_v24  ;;  %464 = vmatpush.msrb.mxu0 %v445_v25 }
  0x33   : > { %621 = vmatmul.msk.f32.gmra.mxu0 %vm292_vm0, %v289_v6  ;;  %624 = vmatmul.msk.f32.gmra.mxu1 %vm292_vm0, %v289_v6 }
  0x34   : > { %490 = vmatpush.msrb.mxu1 %v426_v26  ;;  %638 = vmatpush.msra.mxu2 %v445_v25 }
  0x35   : > { %654 = vmatpush.msra.mxu3 %v426_v26  ;;  %465 = vmatpush.msrb.mxu0 %v444_v27 }
  0x36   : > { %491 = vmatpush.msrb.mxu1 %v425_v28  ;;  %639 = vmatpush.msra.mxu2 %v444_v27 }
  0x37   : > { %655 = vmatpush.msra.mxu3 %v425_v28  ;;  %466 = vmatpush.msrb.mxu0 %v443_v29 }
  0x38   : > { %492 = vmatpush.msrb.mxu1 %v424_v30  ;;  %640 = vmatpush.msra.mxu2 %v443_v29 }
  0x39   : > { %656 = vmatpush.msra.mxu3 %v424_v30  ;;  %467 = vmatpush.msrb.mxu0 %v442_v31 }
  0x3a   : > { %493 = vmatpush.msrb.mxu1 %v423_v32  ;;  %641 = vmatpush.msra.mxu2 %v442_v31 }
  0x3b   : > { %657 = vmatpush.msra.mxu3 %v423_v32  ;;  %468 = vmatpush.msrb.mxu0 %v441_v33 }
  0x3c   : > { %494 = vmatpush.msrb.mxu1 %v422_v34  ;;  %642 = vmatpush.msra.mxu2 %v441_v33 }
  0x3d   : > { %658 = vmatpush.msra.mxu3 %v422_v34  ;;  %469 = vmatpush.msrb.mxu0 %v440_v35 }
  0x3e   : > { %495 = vmatpush.msrb.mxu1 %v421_v36  ;;  %643 = vmatpush.msra.mxu2 %v440_v35 }
  0x3f   : > { %659 = vmatpush.msra.mxu3 %v421_v36  ;;  %470 = vmatpush.msrb.mxu0 %v439_v39 }
  0x40   : > { %496 = vmatpush.msrb.mxu1 %v420_v40  ;;  %644 = vmatpush.msra.mxu2 %v439_v39 }
  0x41   : > { %660 = vmatpush.msra.mxu3 %v420_v40 }
  0xa0   : > { %v319_v37 = vpop.f32.mrf.mxu0  ;;  %v347_v38 = vpop.f32.mrf.mxu1 }
  0xa1   : > { %v356_v41 = vmul.f32 %v319_v37, %v319_v37  ;;  %v359_v42 = vmul.f32 %v347_v38, %v347_v38 }
  0xa3   : > { %v362_v43 = vadd.f32 %v359_v42, %v356_v41 }
  0xa5   : > { %vm365_vm1 = vcmp.gt.f32.partialorder %v362_v43, 0.0 }
  0xa6   : > { %v368_v44 = vsel %vm365_vm1, %v362_v43, 1.0 }
  0xa7   : > { %727 = vrsqrt.f32 %v368_v44  ;;  %vm377_vm5 = vweird.f32 %v368_v44 }
  0xa8   : > { %v322_v45 = vpop.f32.mrf.mxu0  ;;  %v350_v46 = vpop.f32.mrf.mxu1 }
  0xa9   : > { %v357_v47 = vmul.f32 %v322_v45, %v322_v45  ;;  %v360_v48 = vmul.f32 %v350_v46, %v350_v46 }
  0xab   : > { %v363_v49 = vadd.f32 %v360_v48, %v357_v47 }
  0xad   : > { %v728_v50 = vpop.eup %727  ;;  %vm366_vm2 = vcmp.gt.f32.partialorder %v363_v49, 0.0 }
  0xae   : > { %v372_v51 = vmul.f32 %v728_v50, %v368_v44  ;;  %v369_v52 = vsel %vm366_vm2, %v363_v49, 1.0  ;;  %vm378_vm3 = vweird.f32 %v728_v50 }
  0xaf   : > { %729 = vrsqrt.f32 %v369_v52  ;;  %vm379_vm6 = vmor %vm377_vm5, %vm378_vm3  ;;  %vm387_vm8 = vweird.f32 %v369_v52 }
  0xb0   : > { %v373_v53 = vmul.f32 %v728_v50, %v372_v51  ;;  %v325_v54 = vpop.f32.mrf.mxu0  ;;  %v353_v55 = vpop.f32.mrf.mxu1 }
  0xb1   : > { %v358_v56 = vmul.f32 %v325_v54, %v325_v54  ;;  %v361_v57 = vmul.f32 %v353_v55, %v353_v55 }
  0xb2   : > { %v374_v58 = vmul.f32 0.5, %v373_v53 }
  0xb3   : > { %v364_v59 = vadd.f32 %v361_v57, %v358_v56 }
  0xb4   : > { %v375_v60 = vsub.f32 1.5, %v374_v58 }
  0xb5   : > { %v730_v61 = vpop.eup %729  ;;  %vm367_vm4 = vcmp.gt.f32.partialorder %v364_v59, 0.0 }
  0xb6   : > { %v376_v63 = vmul.f32 %v728_v50, %v375_v60  ;;  %v382_v0 = vmul.f32 %v730_v61, %v369_v52  ;;  %v370_v1 = vsel %vm367_vm4, %v364_v59, 1.0  ;;  %vm388_vm7 = vweird.f32 %v730_v61 }
  0xb7   : > { %731 = vrsqrt.f32 %v370_v1  ;;  %vm389_vm9 = vmor %vm387_vm8, %vm388_vm7  ;;  %vm397_vm11 = vweird.f32 %v370_v1 }
  0xb8   : > { %v380_v2 = vsel %vm379_vm6, %v728_v50, %v376_v63  ;;  %v383_v3 = vmul.f32 %v730_v61, %v382_v0 }
  0xb9   : > { %v405_v4 = vmul.f32 %v726_v62, %v380_v2 }
  0xba   : > { %v384_v5 = vmul.f32 0.5, %v383_v3 }
  0xbb   : > { %v408_v6 = vsub.f32 1.0, %v405_v4 }
  0xbc   : > { %v385_v7 = vsub.f32 1.5, %v384_v5 }
  0xbd   : > { %v732_v8 = vpop.eup %731  ;;  %v411_v9 = vmax.f32 %v408_v6, 0.0 }
  0xbe   : > { %v386_v10 = vmul.f32 %v730_v61, %v385_v7  ;;  %v392_v11 = vmul.f32 %v732_v8, %v370_v1  ;;  %vm398_vm10 = vweird.f32 %v732_v8 }
  0xbf   : > { %v414_v12 = vsel %vm365_vm1, %v411_v9, 0.0  ;;  %vm399_vm12 = vmor %vm397_vm11, %vm398_vm10 }
  0xc0   : > { %v417_v13 = vmul.f32 %v414_v12, %v319_v37  ;;  %v436_v14 = vmul.f32 %v414_v12, %v347_v38  ;;  %v390_v15 = vsel %vm389_vm9, %v730_v61, %v386_v10  ;;  %v393_v16 = vmul.f32 %v732_v8, %v392_v11 }
  0xc1   : > { %v406_v17 = vmul.f32 %v726_v62, %v390_v15 }
  0xc2   : > { %471 = vmatmul.f32.vlgmr.msrb.gmra.mxu0 %v436_v14  ;;  %497 = vmatmul.f32.vlgmr.msrb.gmra.mxu1 %v417_v13  ;;  %v394_v18 = vmul.f32 0.5, %v393_v16 }
  0xc3   : > { %v409_v19 = vsub.f32 1.0, %v406_v17 }
  0xc4   : > { %v395_v20 = vsub.f32 1.5, %v394_v18 }
  0xc5   : > { %v412_v21 = vmax.f32 %v409_v19, 0.0 }
  0xc6   : > { %v396_v22 = vmul.f32 %v732_v8, %v395_v20 }
  0xc7   : > { %v415_v23 = vsel %vm366_vm2, %v412_v21, 0.0 }
  0xc8   : > { %v437_v24 = vmul.f32 %v415_v23, %v350_v46  ;;  %v418_v25 = vmul.f32 %v415_v23, %v322_v45  ;;  %v400_v26 = vsel %vm399_vm12, %v732_v8, %v396_v22 }
  0xc9   : > { %v407_v27 = vmul.f32 %v726_v62, %v400_v26 }
  0xca   : > { %474 = vmatmul.f32.vlgmr.msra.gmra.mxu2 %v437_v24  ;;  %500 = vmatmul.f32.vlgmr.msra.gmra.mxu3 %v418_v25 }
  0xcb   : > { %v410_v28 = vsub.f32 1.0, %v407_v27 }
  0xcd   : > { %v413_v29 = vmax.f32 %v410_v28, 0.0 }
  0xcf   : > { %v416_v30 = vsel %vm367_vm4, %v413_v29, 0.0 }
  0xd0   : > { %v438_v31 = vmul.f32 %v416_v30, %v353_v55  ;;  %v419_v32 = vmul.f32 %v416_v30, %v325_v54 }
  0xd2   : > { %477 = vmatmul.f32.gmra.mxu2 %v438_v31  ;;  %503 = vmatmul.f32.gmra.mxu3 %v419_v32 }
 0x13f   : > { %v472_v33 = vpop.f32.mrf.mxu0  ;;  %v498_v34 = vpop.f32.mrf.mxu1 }
 0x140   : > { %v499_v35 = vadd.f32 %v498_v34, %v472_v33 }
 0x142   : > { %507 = vst [vmem:[%s279_s10] sm:$0xff] %v499_v35 }
 0x14d   : > { %v475_v36 = vpop.f32.mrf.mxu2  ;;  %v501_v37 = vpop.f32.mrf.mxu3 }
 0x14e   : > { %v502_v38 = vadd.f32 %v501_v37, %v475_v36 }
 0x150   : > { %508 = vst [vmem:[%s279_s10 + $0x8] sm:$0xff] %v502_v38 }
 0x155   : > { %v478_v39 = vpop.f32.mrf.mxu2  ;;  %v504_v40 = vpop.f32.mrf.mxu3 }
 0x156   : > { %v505_v41 = vadd.f32 %v504_v40, %v478_v39 }
 0x158   : > { %509 = vst [vmem:[%s279_s10 + $0x10] sm:$0xff] %v505_v41 }
 0x159   : > { %820 = shalt.err (!%p817_p8)
}
 0x15a   : > { %s869_s28 = smov 128   ;;  %s870_s10 = smov 8  }
 0x15b   : > { %670 = dma.vmem_to_hbm [thread:$0]  (%p944_p5), %s524_s14, 384, %s526_s15, %s511_s16, %s869_s28, %s869_s28, %s870_s10  }
 0x15c PF: > { %p687_p9 = scmp.ge.s32.totalorder %s863_s24, 2  ;;  %s540_s9 = sand.u32 1, %s851_s21  }
 0x15d   : > { %s541_s11 = scalar_lea.sflag [#allocation4], %s540_s9 }
 0x15e   : > { %p680_p10 = pnand %p687_p9, %p948_p6 }
 0x160   : > { %p681_p11 = pneg %p680_p10 }
 0x162   : > { %846 = dma.done.wait (%p681_p11), %s541_s11, 384  }
 0x163   : > { %848 = vsyncadd (%p681_p11), %s541_s11, 4294966912  ;;  %p18_p12 = scmp.ge.s32.totalorder %s931_s27, 4   ;;  %s1046_s21 = smov %s855_s22 }
 0x164   : > { %s1047_s22 = smov %s859_s23  ;;  %s1048_s23 = smov %s942_s30 }
 0x165   : > { %s1049_s24 = smov %s931_s27  ;;  %20 = sbr.rel (!%p18_p12) target bundleno = 5 (0x5), region = 88 }
 0x16a   :  { %547 = vsyncpa [#allocation3], 1 }
 0x16b   :  { %549 = vsyncpa [#allocation3 + $0x1], 1 }
 0x16c   :  { %550 = vsyncpa [#allocation6], 1 }
 0x16d   :  { %551 = vsyncpa [#allocation4], 1 }
 0x16e   :  { %553 = vsyncpa [#allocation4 + $0x1], 1 }

</bundles_post_ra>
